<compile_context>
chip_gen: v7x
topology: tpu7x:2x2x1
jax: 0.10.0
libtpu: 0.0.40
codegen_flags: <defaults>
</compile_context>

<pallas_src>
import jax
import jax.numpy as jnp
from jax.experimental import pallas as pl
from jax.experimental.pallas import tpu as pltpu


def _round_up(x, m):
    return ((x + m - 1) // m) * m


def _pick_tile(dim, candidates):
    for c in candidates:
        if c <= dim and dim % c == 0:
            return c
    return dim


def _vmem_capacity_bytes():
    try:
        return int(pltpu.get_tpu_info().vmem_capacity_bytes)
    except Exception:
        return 64 << 20  # conservative: v7x per-TensorCore VMEM


# --------------------------------------------------------------------------
# Kernels
# --------------------------------------------------------------------------
def _phgate_small_kernel(x_ref, w_ref, b_ref, o_ref):
    # Whole problem in one VMEM block (tiny shapes; block dims == array dims).
    # x_ref: (m, E), w_ref: (E, E) pre-transposed (in, out), b_ref: (1, E).
    y = jnp.dot(x_ref[...], w_ref[...], preferred_element_type=jnp.float32)
    o_ref[...] = jax.nn.sigmoid(y + b_ref[...].astype(jnp.float32))


def _phgate_tiled_kernel(x_ref, w_ref, b_ref, o_ref):
    # x_ref: (tm, tk)   activation tile
    # w_ref: (tk, tn)   pre-transposed weight tile, canonical (K, N) layout
    # b_ref: (1, tn)    bias tile
    # o_ref: (tm, tn)   f32 output tile -- doubles as the accumulator
    k = pl.program_id(2)

    @pl.when(k == 0)
    def _():
        o_ref[...] = jnp.zeros_like(o_ref)

    o_ref[...] += jnp.dot(x_ref[...], w_ref[...],
                          preferred_element_type=jnp.float32)

    @pl.when(k == pl.num_programs(2) - 1)
    def _():
        o_ref[...] = jax.nn.sigmoid(o_ref[...] + b_ref[...].astype(jnp.float32))


# --------------------------------------------------------------------------
# One-time parameter preparation (hoisted out of the per-call path)
# --------------------------------------------------------------------------
def phgate_init(weight, bias, *, mxu_dtype=jnp.bfloat16):
    """Prepare nn.Linear(embed, embed) params for the Pallas kernel, ONCE.

    weight: (embed, embed) in PyTorch (out, in) layout.
    bias:   (embed,)
    mxu_dtype: compute dtype for the MXU operands (bf16 default; accumulation
               and the bias+sigmoid epilogue stay f32). None = strict f32.
    """
    embed = weight.shape[0]
    assert weight.shape == (embed, embed)
    e_pad = embed if embed <= 128 else _round_up(embed, 128)

    w_t = jnp.transpose(weight)          # (in, out) == (K, N): canonical layout
    b = bias.astype(jnp.float32)
    if e_pad != embed:
        w_t = jnp.pad(w_t, ((0, e_pad - embed), (0, e_pad - embed)))
        b = jnp.pad(b, (0, e_pad - embed))
    if mxu_dtype is not None:
        w_t = w_t.astype(mxu_dtype)

    return {
        "w_t": w_t,                      # (e_pad, e_pad), MXU dtype
        "b2d": b.reshape(1, e_pad),      # (1, e_pad), f32
        "embed": embed,
        "e_pad": e_pad,
        "mxu_dtype": mxu_dtype,
    }


# --------------------------------------------------------------------------
# Forward
# --------------------------------------------------------------------------
def phgate_forward(x, params, *, tiles=None):
    """sigmoid(x @ W^T + b) for x of shape (batch, 1, embed)."""
    batch, one, embed = x.shape
    assert embed == params["embed"]
    out_dtype = x.dtype
    e_pad = params["e_pad"]
    w_t = params["w_t"]
    b2d = params["b2d"]
    mxu_dtype = params["mxu_dtype"]

    m = batch * one
    x2d = x.reshape(m, embed)
    if mxu_dtype is not None:
        x2d = x2d.astype(mxu_dtype)

    # ---- Tiny problems: single full-array block, one grid step, no padding
    # of M and (for embed <= 128) no lane padding at all.
    if tiles is None and m <= 64 and e_pad <= 1024:
        if e_pad != embed:
            x2d = jnp.pad(x2d, ((0, 0), (0, e_pad - embed)))
        out2d = pl.pallas_call(
            _phgate_small_kernel,
            out_shape=jax.ShapeDtypeStruct((m, e_pad), jnp.float32),
            grid=(1,),
            in_specs=[
                pl.BlockSpec((m, e_pad), lambda i: (0, 0)),
                pl.BlockSpec((e_pad, e_pad), lambda i: (0, 0)),
                pl.BlockSpec((1, e_pad), lambda i: (0, 0)),
            ],
            out_specs=pl.BlockSpec((m, e_pad), lambda i: (0, 0)),
        )(x2d, w_t, b2d)
        out2d = out2d[:, :embed]
        if out_dtype != jnp.float32:
            out2d = out2d.astype(out_dtype)
        return out2d.reshape(batch, one, embed)

    # ---- Tiled path --------------------------------------------------------
    m8 = _round_up(m, 8)
    if tiles is not None:
        tm, tn, tk = tiles
        assert e_pad % tn == 0 and e_pad % tk == 0, "tiles must divide padded E"
    elif m8 <= 64:
        # GEMV / decode regime: one M tile, large contiguous K tile, wide N,
        # but keep >= 2 N steps so v7x can split the N axis across its 2 TCs.
        tm = m8
        tk = e_pad if e_pad <= 2048 else _pick_tile(e_pad, (2048, 1024, 512, 256, 128))
        tn = _pick_tile(e_pad, (512, 256, 128))
        if e_pad // tn < 2 and tn >= 256:
            tn //= 2
    else:
        # Large-M regime: big M tile so the E x E weight is re-read as few
        # times as possible from HBM.
        tm = _pick_tile(m8, (512, 256, 128))
        if tm > 512:
            tm = 256
        tk = _pick_tile(e_pad, (512, 256, 128))
        tn = _pick_tile(e_pad, (512, 256, 128))
        if m8 // tm == 1 and e_pad // tn < 2 and tn >= 256:
            tn //= 2
    m_pad = _round_up(m, tm)

    if m_pad != m or e_pad != embed:
        x2d = jnp.pad(x2d, ((0, m_pad - m), (0, e_pad - embed)))

    grid = (m_pad // tm, e_pad // tn, e_pad // tk)

    # VMEM budget: double-buffered x/W/bias/out tiles, clamped to chip budget.
    in_bytes = jnp.dtype(x2d.dtype).itemsize
    w_bytes = jnp.dtype(w_t.dtype).itemsize
    need = 2 * (tm * tk * in_bytes      # x tile (2 buffers)
                + tk * tn * w_bytes     # W tile
                + tn * 4                # bias tile
                + tm * tn * 4)          # f32 output tile (also the accumulator)
    vmem_cap = _vmem_capacity_bytes()
    vmem_limit = max(4 << 20, min(need + (2 << 20), (vmem_cap * 3) // 4))

    cost = pl.CostEstimate(
        flops=2 * m_pad * e_pad * e_pad,
        transcendentals=m_pad * e_pad,
        bytes_accessed=(grid[0] * e_pad * e_pad * w_bytes   # W re-read per M tile
                        + grid[1] * m_pad * e_pad * in_bytes  # x re-read per N tile
                        + grid[0] * e_pad * 4                 # bias
                        + m_pad * e_pad * 4),                 # output writes
    )

    out2d = pl.pallas_call(
        _phgate_tiled_kernel,
        out_shape=jax.ShapeDtypeStruct((m_pad, e_pad), jnp.float32),
        grid_spec=pltpu.PrefetchScalarGridSpec(
            num_scalar_prefetch=0,
            grid=grid,
            in_specs=[
                pl.BlockSpec((tm, tk), lambda i, j, k: (i, k)),   # x
                pl.BlockSpec((tk, tn), lambda i, j, k: (k, j)),   # W^T  (K, N)
                pl.BlockSpec((1, tn), lambda i, j, k: (0, j)),    # bias (N only)
            ],
            out_specs=pl.BlockSpec((tm, tn), lambda i, j, k: (i, j)),
        ),
        compiler_params=pltpu.CompilerParams(
            dimension_semantics=("parallel", "parallel", "arbitrary"),
            vmem_limit_bytes=vmem_limit,
        ),
        cost_estimate=cost,
    )(x2d, w_t, b2d)

    out2d = out2d[:m, :embed]
    if out_dtype != jnp.float32:
        out2d = out2d.astype(out_dtype)
    return out2d.reshape(batch, one, embed)


# --------------------------------------------------------------------------
# Self-check
# --------------------------------------------------------------------------
if __name__ == "__main__":
    # ---- Spec-sized case: batch=2, embed=32 (pHGate forward), strict f32 ---
    batch, embed_size = 2, 32
    key = jax.random.PRNGKey(0)
    kx, kw, kb = jax.random.split(key, 3)
    bound = 1.0 / (embed_size ** 0.5)
    weight = jax.random.uniform(kw, (embed_size, embed_size),
                                minval=-bound, maxval=bound, dtype=jnp.float32)
    bias = jax.random.uniform(kb, (embed_size,),
                              minval=-bound, maxval=bound, dtype=jnp.float32)
    x = jax.random.normal(kx, (batch, 1, embed_size), dtype=jnp.float32)

    params_f32 = phgate_init(weight, bias, mxu_dtype=None)      # strict-f32 path
    gate = jax.block_until_ready(phgate_forward(x, params_f32))
    ref = jax.nn.sigmoid(
        jnp.matmul(x, weight.T, precision=jax.lax.Precision.HIGHEST) + bias)
    assert gate.shape == (batch, 1, embed_size)
    assert gate.dtype == x.dtype
    assert jnp.allclose(gate, ref, atol=1e-5, rtol=1e-5)

    # ---- Tiled-path coverage (forced small tiles -> 2x2x2 grid), f32 -------
    b2, e2 = 128, 256
    k2x, k2w, k2b = jax.random.split(jax.random.PRNGKey(0), 3)
    bound2 = 1.0 / (e2 ** 0.5)
    w2 = jax.random.uniform(k2w, (e2, e2), minval=-bound2, maxval=bound2,
                            dtype=jnp.float32)
    bias2 = jax.random.uniform(k2b, (e2,), minval=-bound2, maxval=bound2,
                               dtype=jnp.float32)
    x2 = jax.random.normal(k2x, (b2, 1, e2), dtype=jnp.float32)
    ref2 = jax.nn.sigmoid(
        jnp.matmul(x2, w2.T, precision=jax.lax.Precision.HIGHEST) + bias2)

    p2_f32 = phgate_init(w2, bias2, mxu_dtype=None)
    g2 = jax.block_until_ready(phgate_forward(x2, p2_f32, tiles=(64, 128, 128)))
    assert jnp.allclose(g2, ref2, atol=1e-4, rtol=1e-4)

    # ---- Default bf16-MXU path, automatic tile selection --------------------
    p2_bf16 = phgate_init(w2, bias2)                 # bf16 weights by default
    g2b = jax.block_until_ready(phgate_forward(x2, p2_bf16))
    assert jnp.allclose(g2b, ref2, atol=2e-2, rtol=2e-2)

    print("KERNEL_OK")
</pallas_src>

<mosaic_0001>
module attributes {stable_mosaic.version = 11 : i64} {
  func.func @_phgate_small_kernel(%arg0: i32, %arg1: memref<2x32xf32, #tpu.memory_space<vmem>>, %arg2: memref<32x32xf32, #tpu.memory_space<vmem>>, %arg3: memref<1x32xf32, #tpu.memory_space<vmem>>, %arg4: memref<2x32xf32, #tpu.memory_space<vmem>>) attributes {dimension_semantics = [#tpu.dimension_semantics<arbitrary>], iteration_bounds = array<i64: 1>, scalar_prefetch = 0 : i64, scratch_operands = 0 : i64, tpu.core_type = #tpu.core_type<tc>, window_params = [{pipeline_mode = #tpu.pipeline_mode<synchronous>, transform_indices = @transform_0, window_bounds = array<i64: 2, 32>}, {pipeline_mode = #tpu.pipeline_mode<synchronous>, transform_indices = @transform_1, window_bounds = array<i64: 32, 32>}, {pipeline_mode = #tpu.pipeline_mode<synchronous>, transform_indices = @transform_2, window_bounds = array<i64: 1, 32>}, {pipeline_mode = #tpu.pipeline_mode<synchronous>, transform_indices = @transform_3, window_bounds = array<i64: 2, 32>}]} {
    %c0 = arith.constant 0 : index
    %c0_0 = arith.constant 0 : index
    %0 = vector.load %arg1[%c0, %c0_0] : memref<2x32xf32, #tpu.memory_space<vmem>>, vector<2x32xf32>
    %c0_1 = arith.constant 0 : index
    %c0_2 = arith.constant 0 : index
    %1 = vector.load %arg2[%c0_1, %c0_2] : memref<32x32xf32, #tpu.memory_space<vmem>>, vector<32x32xf32>
    %cst = arith.constant dense<0.000000e+00> : vector<2x32xf32>
    %2 = tpu.matmul %0, %1, %cst {dimension_numbers = #tpu.dot_dimension_numbers<[1], [0], [0], [1], [0, 0, 1, 1], [], []>} : vector<2x32xf32>, vector<32x32xf32>, vector<2x32xf32> -> vector<2x32xf32>
    %c0_3 = arith.constant 0 : index
    %c0_4 = arith.constant 0 : index
    %3 = vector.load %arg3[%c0_3, %c0_4] : memref<1x32xf32, #tpu.memory_space<vmem>>, vector<1x32xf32>
    %4 = vector.broadcast %3 : vector<1x32xf32> to vector<2x32xf32>
    %5 = arith.addf %2, %4 : vector<2x32xf32>
    %6 = arith.negf %5 : vector<2x32xf32>
    %7 = math.exp %6 : vector<2x32xf32>
    %cst_5 = arith.constant 1.000000e+00 : f32
    %8 = vector.broadcast %cst_5 : f32 to vector<2x32xf32>
    %9 = arith.addf %8, %7 : vector<2x32xf32>
    %10 = arith.divf %8, %9 : vector<2x32xf32>
    %c0_6 = arith.constant 0 : index
    %c0_7 = arith.constant 0 : index
    %11 = vector.load %arg4[%c0_6, %c0_7] : memref<2x32xf32, #tpu.memory_space<vmem>>, vector<2x32xf32>
    tpu.vector_store %arg4[%c0_6, %c0_7], %10 {strides = array<i32>} : memref<2x32xf32, #tpu.memory_space<vmem>>, vector<2x32xf32>,
    return
  }
  func.func @transform_0(%arg0: i32) -> (i32, i32) {
    %c0_i32 = arith.constant 0 : i32
    %c0_i32_0 = arith.constant 0 : i32
    %c0_i32_1 = arith.constant 0 : i32
    return %c0_i32, %c0_i32_0 : i32, i32
  }
  func.func @transform_1(%arg0: i32) -> (i32, i32) {
    %c0_i32 = arith.constant 0 : i32
    %c0_i32_0 = arith.constant 0 : i32
    %c0_i32_1 = arith.constant 0 : i32
    return %c0_i32, %c0_i32_0 : i32, i32
  }
  func.func @transform_2(%arg0: i32) -> (i32, i32) {
    %c0_i32 = arith.constant 0 : i32
    %c0_i32_0 = arith.constant 0 : i32
    %c0_i32_1 = arith.constant 0 : i32
    return %c0_i32, %c0_i32_0 : i32, i32
  }
  func.func @transform_3(%arg0: i32) -> (i32, i32) {
    %c0_i32 = arith.constant 0 : i32
    %c0_i32_0 = arith.constant 0 : i32
    %c0_i32_1 = arith.constant 0 : i32
    return %c0_i32, %c0_i32_0 : i32, i32
  }
}

</mosaic_0001>

<bundles_post_ra>
// kernel: tpu_custom_call.1
= control target key start
LH: loop header
LB: loop body
LE: loop exit
PB: predicated region body
PF: predicated region fallthrough
CT: control target
= control target key end

     0   :  { %8 = vsyncpa [#allocation3], 0  ;;  %s334_s0 = inlined_call_operand.hbm [shape: f32[2,32], index: 0, kind: input, shape index: {}]   ;;  %s335_s1 = inlined_call_operand.hbm [shape: f32[32,32], index: 1, kind: input, shape index: {}]   ;;  %s336_s2 = inlined_call_operand.vmem [shape: f32[1,32], index: 2, kind: input, shape index: {}]   ;;  %s337_s3 = inlined_call_operand.hbm [shape: f32[2,32], index: 3, kind: output, shape index: {}]  }
   0x1   :  { %9 = vsyncpa [#allocation6], 0 }
   0x2   :  { %10 = vsyncpa [#allocation4], 0  ;;  %s260_s12 = smov [#allocation2]   ;;  %s261_s14 = smov [#allocation5]  }
   0x3   :  { %s17_s13 = sshll.u32 %s260_s12, 4  ;;  %s26_s15 = sshll.u32 %s261_s14, 4  ;;  %s18_s13 = int_to_ptr.vmem [resolvable:$true] %s17_s13  ;;  %s288_s15 = int_to_ptr.vmem [resolvable:$true] %s26_s15 }
   0x4   :  { %s188_s18 = scalar_lea.hbm %s334_s0, 32 }
   0x5   :  { %p189_p0 = scmp.ne.s32.totalorder %s334_s0, %s188_s18  ;;  %p192_p1 = scmp.lt.u32.totalorder %s188_s18, %s334_s0 }
   0x7   :  { %p194_p2 = pnand %p192_p1, %p189_p0 }
   0x9   :  { %197 = shalt.err (!%p194_p2)
}
   0xa   :  { %s198_s23 = scalar_lea.vmem %s18_s13, 32  ;;  %p203_p4 = scmp.lt.s32.totalorder %s18_s13, %s18_s13 }
   0xb   :  { %p199_p3 = scmp.ne.s32.totalorder %s18_s13, %s198_s23  ;;  %p204_p5 = scmp.lt.s32.totalorder %s198_s23, %s198_s23 }
   0xd   :  { %p205_p6 = por %p204_p5, %p203_p4 }
   0xf   :  { %p206_p7 = pnand %p205_p6, %p199_p3 }
  0x11   :  { %209 = shalt.err (!%p206_p7)
}
  0x12   :  { %20 = dma.hbm_to_vmem [thread:$0]  %s334_s0, 32, %s18_s13, [#allocation3]  }
  0x13   :  { %s210_s28 = scalar_lea.hbm %s335_s1, 512 }
  0x14   :  { %p211_p8 = scmp.ne.s32.totalorder %s335_s1, %s210_s28  ;;  %p214_p9 = scmp.lt.u32.totalorder %s210_s28, %s335_s1 }
  0x16   :  { %p216_p10 = pnand %p214_p9, %p211_p8 }
  0x18   :  { %219 = shalt.err (!%p216_p10)
}
  0x19   :  { %s220_s6 = scalar_lea.vmem %s288_s15, 512  ;;  %p225_p12 = scmp.lt.s32.totalorder %s288_s15, %s288_s15 }
  0x1a   :  { %p221_p11 = scmp.ne.s32.totalorder %s288_s15, %s220_s6  ;;  %p226_p13 = scmp.lt.s32.totalorder %s220_s6, %s220_s6 }
  0x1c   :  { %p227_p0 = por %p226_p13, %p225_p12 }
  0x1e   :  { %p228_p1 = pnand %p227_p0, %p221_p11 }
  0x20   :  { %231 = shalt.err (!%p228_p1)
}
  0x21   :  { %s262_s0 = smov 128   ;;  %s263_s7 = smov 8  }
  0x22   :  { %32 = dma.hbm_to_vmem [thread:$0]  %s335_s1, 512, %s288_s15, [#allocation6], %s262_s0, %s262_s0, %s263_s7  }
  0x23   :  { %254 = dma.done.wait [#allocation3], 32  }
  0x24   :  { %255 = vsyncadd [#allocation3], 4294967264 }
  0x25   :  { %256 = dma.done.wait [#allocation6], 512  }
  0x26   :  { %257 = vsyncadd [#allocation6], 4294966784  ;;  %v264_v0 = vmov 0.0|0.0   ;;  %vm265_vm0 = vmmov 0   ;;  %v266_v1 = vmov 0.0   ;;  %v42_v2 = vld [vmem:[#allocation5] sm:$0xff] }
  0x27   :  { %170 = vmatprep.subr.bf16.mxu0 %v264_v0  ;;  %167 = vmatprep.mubr.msk.f32.mxu0 %vm265_vm0, %v266_v1  ;;  %v43_v3 = vld [vmem:[#allocation5 + $0x8] sm:$0xff]  ;;  %v44_v4 = vld [vmem:[#allocation5 + $0x10] sm:$0xff]  ;;  %v45_v6 = vld [vmem:[#allocation5 + $0x18] sm:$0xff]  ;;  %vm53_vm1 = vcmask 261120   ;;  %s267_s11 = smov [#allocation7]   ;;  %vm133_vm2 = vcmask 254976  }
  0x28   :  { %v171_v5 = vpack.c.bf16 %v43_v3, %v42_v2  ;;  %v174_v7 = vpack.c.bf16 %v45_v6, %v44_v4  ;;  %v41_v8 = vld [vmem:[#allocation2] sm:$0x3]  ;;  %s141_s12 = sshll.u32 %s267_s11, 4  ;;  %s142_s12 = int_to_ptr.vmem [resolvable:$true] %s141_s12 }
  0x29   :  { %v151_v9 = vld [vmem:[%s336_s2] ss:$0 sm:$0xff]  ;;  %s232_s13 = scalar_lea.vmem %s142_s12, 32  ;;  %p237_p3 = scmp.lt.s32.totalorder %s142_s12, %s142_s12 }
  0x2a   :  { %172 = vmatpush3.bf16.msra.mxu0 %v171_v5  ;;  %p233_p2 = scmp.ne.s32.totalorder %s142_s12, %s232_s13  ;;  %p238_p4 = scmp.lt.s32.totalorder %s232_s13, %s232_s13 }
  0x2b   :  { %173 = vmatprep.subr.bf16.mxu0 %v264_v0 }
  0x2c   :  { %p239_p5 = por %p238_p4, %p237_p3 }
  0x2e   :  { %175 = vmatpush3.bf16.msra.mxu0 %v174_v7  ;;  %p240_p6 = pnand %p239_p5, %p233_p2 }
  0x31   :  { %168 = vmatmul.mubr.msk.f32.vlgmr.msra.gmra.mrb[0].mxu0 %vm53_vm1, %v41_v8 }
 0x104   :  { %v123_v10 = vpop.f32.mrb[0].mxu0 }
 0x105   :  { %v124_v11 = vadd.f32 %v151_v9, %v123_v10  ;;  %v169_v12 = vpop.f32.mrb[1].mxu0 }
 0x107   :  { %v153_v13 = vmul.f32 -1.442695, %v124_v11 }
 0x109   :  { %184 = vpow2.f32 %v153_v13 }
 0x113   :  { %v185_v14 = vpop.eup %184 }
 0x114   :  { %v130_v15 = vadd.f32 1.0, %v185_v14 }
 0x116   :  { %186 = vrcp.f32 %v130_v15 }
 0x120   :  { %v187_v16 = vpop.eup %186 }
 0x121   :  { %134 = vst.msk [vmem:[#allocation7] sm:$0x3] %vm133_vm2, %v187_v16 }
 0x122   :  { %243 = shalt.err (!%p240_p6)
}
 0x123   :  { %s244_s15 = scalar_lea.hbm %s337_s3, 32 }
 0x124   :  { %p245_p7 = scmp.ne.s32.totalorder %s337_s3, %s244_s15  ;;  %p248_p8 = scmp.lt.u32.totalorder %s244_s15, %s337_s3 }
 0x126   :  { %p250_p9 = pnand %p248_p8, %p245_p7 }
 0x128   :  { %253 = shalt.err (!%p250_p9)
}
 0x129   :  { %144 = dma.vmem_to_hbm [thread:$0]  %s142_s12, 32, %s337_s3, [#allocation4]  }
 0x12a   :  { %258 = dma.done.wait [#allocation4], 32  }
 0x12b   :  { %259 = vsyncadd [#allocation4], 4294967264 }
 0x12c   :  { %148 = vsyncpa [#allocation3], 1 }
 0x12d   :  { %149 = vsyncpa [#allocation6], 1 }
 0x12e   :  { %150 = vsyncpa [#allocation4], 1 }

</bundles_post_ra>
